<compile_context>
chip_gen: v6e
topology: v6e:2x2x1
jax: 0.10.0
libtpu: 0.0.40
codegen_flags: <defaults>
</compile_context>

<pallas_src>
import jax
import jax.numpy as jnp
from jax.experimental import pallas as pl
from jax.experimental.pallas import tpu as pltpu


def mf_kernel(u_ref, v_ref, w_ref, b_ref, o_ref):
    # u_ref, v_ref: (D, TB) activation tiles, batch on the lane axis.
    # w_ref:        (D, 2)  column 0 = user weights, column 1 = item weights.
    # b_ref:        (1,)    f32 scalar in SMEM.
    # o_ref:        (1, TB) lane-dense output row for this batch tile.
    wu = w_ref[:, 0:1]                               # (D, 1) broadcast over lanes
    wv = w_ref[:, 1:2]                               # (D, 1)
    # Fused: one multiply-add on the VPU, ONE sublane reduce (XLU) -> (1, TB).
    s = jnp.sum(u_ref[...] * wu + v_ref[...] * wv, axis=0, keepdims=True)
    o_ref[...] = jax.nn.sigmoid(s + b_ref[0])


def mfnet_forward(user_id, item_id, user_emb, item_emb, w, b, *, tb=256):
    """user_id, item_id: (B,) int32; user_emb: (U, D); item_emb: (I, D);
    w: (1, 2D) (torch Linear weight layout); b: (1,).  Returns (B,) float32."""
    B = user_id.shape[0]
    U, D = user_emb.shape
    I = item_emb.shape[0]

    # Clamp ids so a bad id cannot gather out of range.
    uid = jnp.clip(user_id.astype(jnp.int32), 0, U - 1)
    iid = jnp.clip(item_id.astype(jnp.int32), 0, I - 1)

    # Pre-gather with XLA: one contiguous (B, D) activation per table.
    u = user_emb[uid].astype(jnp.float32)            # (B, D)
    v = item_emb[iid].astype(jnp.float32)            # (B, D)

    # Put the batch on the lane axis, padded to a multiple of the lane tile.
    nt = pl.cdiv(B, tb)
    Bp = nt * tb
    ut = jnp.pad(u.T, ((0, 0), (0, Bp - B)))         # (D, Bp)
    vt = jnp.pad(v.T, ((0, 0), (0, Bp - B)))         # (D, Bp)

    # Linear(2D -> 1): weight cols 0..D-1 -> user part, D..2D-1 -> item part.
    wcol = w.reshape(2, D).T.astype(jnp.float32)     # (D, 2)
    bias = b.reshape(1).astype(jnp.float32)          # (1,)  -> SMEM scalar

    out = pl.pallas_call(
        mf_kernel,
        out_shape=jax.ShapeDtypeStruct((1, Bp), jnp.float32),
        grid=(nt,),
        in_specs=[
            pl.BlockSpec((D, tb), lambda i: (0, i)),            # user activations
            pl.BlockSpec((D, tb), lambda i: (0, i)),            # item activations
            pl.BlockSpec((D, 2), lambda i: (0, 0)),              # grid-invariant weight
            pl.BlockSpec(memory_space=pltpu.MemorySpace.SMEM),   # bias scalar
        ],
        out_specs=pl.BlockSpec((1, tb), lambda i: (0, i)),       # lane-dense row
        compiler_params=pltpu.CompilerParams(
            dimension_semantics=("parallel",)),
    )(ut, vt, wcol, bias)

    return out.reshape(-1)[:B]                       # torch.squeeze(..., dim=-1)


if __name__ == "__main__":
    # Small, deterministic configuration.
    USER_NUM, ITEM_NUM, LATENT_DIM, BATCH = 20, 15, 32, 8

    key = jax.random.PRNGKey(0)
    k_ue, k_ie, k_w, k_b, k_u, k_i = jax.random.split(key, 6)

    # Parameter init (deterministic, mimicking nn.Embedding N(0,1) and nn.Linear uniform).
    user_emb = jax.random.normal(k_ue, (USER_NUM, LATENT_DIM), jnp.float32)
    item_emb = jax.random.normal(k_ie, (ITEM_NUM, LATENT_DIM), jnp.float32)
    bound = 1.0 / jnp.sqrt(2 * LATENT_DIM)
    w = jax.random.uniform(k_w, (1, 2 * LATENT_DIM), jnp.float32, -bound, bound)
    b = jax.random.uniform(k_b, (1,), jnp.float32, -bound, bound)

    # Example inputs.
    user_id = jax.random.randint(k_u, (BATCH,), 0, USER_NUM, dtype=jnp.int32)
    item_id = jax.random.randint(k_i, (BATCH,), 0, ITEM_NUM, dtype=jnp.int32)

    out = mfnet_forward(user_id, item_id, user_emb, item_emb, w, b)
    out = jax.block_until_ready(out)

    # Pure-JAX reference (same math as the PyTorch forward).
    u = user_emb[user_id]
    v = item_emb[item_id]
    x = jnp.concatenate([u, v], axis=-1)
    ref = jax.nn.sigmoid(x @ w.T + b)[:, 0]

    assert out.shape == (BATCH,)
    assert jnp.allclose(out, ref, atol=1e-5, rtol=1e-5), (out, ref)
    print("KERNEL_OK")
</pallas_src>

<mosaic_0001>
module attributes {stable_mosaic.version = 11 : i64} {
  func.func @mf_kernel(%arg0: i32, %arg1: memref<32x256xf32, #tpu.memory_space<vmem>>, %arg2: memref<32x256xf32, #tpu.memory_space<vmem>>, %arg3: memref<32x2xf32, #tpu.memory_space<vmem>>, %arg4: memref<1xf32, #tpu.memory_space<smem>>, %arg5: memref<1x256xf32, #tpu.memory_space<vmem>>) attributes {dimension_semantics = [#tpu.dimension_semantics<parallel>], iteration_bounds = array<i64: 1>, scalar_prefetch = 0 : i64, scratch_operands = 0 : i64, tpu.core_type = #tpu.core_type<tc>, window_params = [{transform_indices = @transform_0, window_bounds = array<i64: 32, 256>}, {transform_indices = @transform_1, window_bounds = array<i64: 32, 256>}, {pipeline_mode = #tpu.pipeline_mode<synchronous>, transform_indices = @transform_2, window_bounds = array<i64: 32, 2>}, {transform_indices = @transform_3, window_bounds = array<i64: 1>}, {transform_indices = @transform_4, window_bounds = array<i64: 1, 256>}]} {
    %c0 = arith.constant 0 : index
    %c0_0 = arith.constant 0 : index
    %0 = vector.load %arg3[%c0, %c0_0] : memref<32x2xf32, #tpu.memory_space<vmem>>, vector<32x1xf32>
    %c0_1 = arith.constant 0 : index
    %c1 = arith.constant 1 : index
    %1 = vector.load %arg3[%c0_1, %c1] : memref<32x2xf32, #tpu.memory_space<vmem>>, vector<32x1xf32>
    %c0_2 = arith.constant 0 : index
    %c0_3 = arith.constant 0 : index
    %2 = vector.load %arg1[%c0_2, %c0_3] : memref<32x256xf32, #tpu.memory_space<vmem>>, vector<32x256xf32>
    %3 = vector.broadcast %0 : vector<32x1xf32> to vector<32x256xf32>
    %4 = arith.mulf %2, %3 : vector<32x256xf32>
    %c0_4 = arith.constant 0 : index
    %c0_5 = arith.constant 0 : index
    %5 = vector.load %arg2[%c0_4, %c0_5] : memref<32x256xf32, #tpu.memory_space<vmem>>, vector<32x256xf32>
    %6 = vector.broadcast %1 : vector<32x1xf32> to vector<32x256xf32>
    %7 = arith.mulf %5, %6 : vector<32x256xf32>
    %8 = arith.addf %4, %7 : vector<32x256xf32>
    %cst = arith.constant dense<0.000000e+00> : vector<256xf32>
    %9 = vector.multi_reduction <add>, %8, %cst [0] : vector<32x256xf32> to vector<256xf32>
    %10 = vector.shape_cast %9 : vector<256xf32> to vector<1x256xf32>
    %c0_6 = arith.constant 0 : index
    %11 = memref.load %arg4[%c0_6] : memref<1xf32, #tpu.memory_space<smem>>
    %12 = vector.broadcast %11 : f32 to vector<1x256xf32>
    %13 = arith.addf %10, %12 : vector<1x256xf32>
    %14 = arith.negf %13 : vector<1x256xf32>
    %15 = math.exp %14 : vector<1x256xf32>
    %cst_7 = arith.constant 1.000000e+00 : f32
    %16 = vector.broadcast %cst_7 : f32 to vector<1x256xf32>
    %17 = arith.addf %16, %15 : vector<1x256xf32>
    %18 = arith.divf %16, %17 : vector<1x256xf32>
    %c0_8 = arith.constant 0 : index
    %c0_9 = arith.constant 0 : index
    %19 = vector.load %arg5[%c0_8, %c0_9] : memref<1x256xf32, #tpu.memory_space<vmem>>, vector<1x256xf32>
    tpu.vector_store %arg5[%c0_8, %c0_9], %18 {strides = array<i32>} : memref<1x256xf32, #tpu.memory_space<vmem>>, vector<1x256xf32>,
    return
  }
  func.func @transform_0(%arg0: i32) -> (i32, i32) {
    %c0_i32 = arith.constant 0 : i32
    %c0_i32_0 = arith.constant 0 : i32
    return %c0_i32, %arg0 : i32, i32
  }
  func.func @transform_1(%arg0: i32) -> (i32, i32) {
    %c0_i32 = arith.constant 0 : i32
    %c0_i32_0 = arith.constant 0 : i32
    return %c0_i32, %arg0 : i32, i32
  }
  func.func @transform_2(%arg0: i32) -> (i32, i32) {
    %c0_i32 = arith.constant 0 : i32
    %c0_i32_0 = arith.constant 0 : i32
    %c0_i32_1 = arith.constant 0 : i32
    return %c0_i32, %c0_i32_0 : i32, i32
  }
  func.func @transform_3(%arg0: i32) -> i32 {
    %c0_i32 = arith.constant 0 : i32
    %c0_i32_0 = arith.constant 0 : i32
    return %c0_i32 : i32
  }
  func.func @transform_4(%arg0: i32) -> (i32, i32) {
    %c0_i32 = arith.constant 0 : i32
    %c0_i32_0 = arith.constant 0 : i32
    return %c0_i32, %arg0 : i32, i32
  }
}

</mosaic_0001>

<bundles_post_ra>
// kernel: tpu_custom_call.1
= control target key start
LH: loop header
LB: loop body
LE: loop exit
PB: predicated region body
PF: predicated region fallthrough
CT: control target
= control target key end

     0   :  { %10 = vsyncpa [#allocation4], 0  ;;  %s344_s0 = inlined_call_operand.hbm [shape: f32[32,256], index: 0, kind: input, shape index: {}]   ;;  %s345_s1 = inlined_call_operand.hbm [shape: f32[32,256], index: 1, kind: input, shape index: {}]   ;;  %s346_s2 = inlined_call_operand.vmem [shape: f32[32,2], index: 2, kind: input, shape index: {}]   ;;  %s347_s3 = inlined_call_operand.<no memory space> [shape: f32[1], index: 3, kind: input, shape index: {}]   ;;  %s348_s4 = inlined_call_operand.hbm [shape: f32[1,256], index: 4, kind: output, shape index: {}]  }
   0x1   :  { %11 = vsyncpa [#allocation7], 0 }
   0x2   :  { %12 = vsyncpa [#allocation5], 0  ;;  %s287_s15 = smov [#allocation3]  }
   0x3   :  { %s18_s16 = sshll.u32 %s287_s15, 4  ;;  %s19_s16 = int_to_ptr.vmem [resolvable:$true] %s18_s16 }
   0x4   :  { %s229_s17 = scalar_lea.vmem %s19_s16, 1024  ;;  %p234_p1 = scmp.lt.s32.totalorder %s19_s16, %s19_s16 }
   0x5   :  { %p230_p0 = scmp.ne.s32.totalorder %s19_s16, %s229_s17  ;;  %p235_p2 = scmp.lt.s32.totalorder %s229_s17, %s229_s17 }
   0x7   :  { %p236_p3 = por %p235_p2, %p234_p1 }
   0x9   :  { %p237_p4 = pnand %p236_p3, %p230_p0 }
   0xb   :  { %240 = shalt.err (!%p237_p4)
}
   0xc   :  { %s288_s18 = smov 256   ;;  %s289_s19 = smov 16  }
   0xd   :  { %24 = dma.hbm_to_vmem [thread:$0]  %s344_s0, 1024, %s19_s16, [#allocation4], %s288_s18, %s288_s18, %s289_s19  }
   0xe   :  { %s290_s22 = smov [#allocation6]  }
   0xf   :  { %s30_s23 = sshll.u32 %s290_s22, 4  ;;  %s31_s23 = int_to_ptr.vmem [resolvable:$true] %s30_s23 }
  0x10   :  { %s249_s24 = scalar_lea.vmem %s31_s23, 1024  ;;  %p254_p6 = scmp.lt.s32.totalorder %s31_s23, %s31_s23 }
  0x11   :  { %p250_p5 = scmp.ne.s32.totalorder %s31_s23, %s249_s24  ;;  %p255_p7 = scmp.lt.s32.totalorder %s249_s24, %s249_s24 }
  0x13   :  { %p256_p8 = por %p255_p7, %p254_p6 }
  0x15   :  { %p257_p9 = pnand %p256_p8, %p250_p5 }
  0x17   :  { %260 = shalt.err (!%p257_p9)
}
  0x18   :  { %36 = dma.hbm_to_vmem [thread:$0]  %s345_s1, 1024, %s31_s23, [#allocation7], %s288_s18, %s288_s18, %s289_s19  }
  0x19   :  { %281 = dma.done.wait [#allocation4], 1024  }
  0x1a   :  { %282 = vsyncadd [#allocation4], 4294966272 }
  0x1b   :  { %283 = dma.done.wait [#allocation7], 1024  }
  0x1c   :  { %284 = vsyncadd [#allocation7], 4294966272  ;;  %v291_v0 = vmov 1   ;;  %v292_v1 = vmov 0   ;;  %v47_v2 = vld [vmem:[%s346_s2] sm:$0xff]  ;;  %v48_v3 = vld [vmem:[%s346_s2 + $0x8] sm:$0xff] }
  0x1d   :  { %211 = vset.pattern.permute.xlu1 %v291_v0  ;;  %210 = vset.pattern.permute.xlu0 %v292_v1  ;;  %v49_v4 = vld [vmem:[%s346_s2 + $0x10] sm:$0xff]  ;;  %v50_v5 = vld [vmem:[%s346_s2 + $0x18] sm:$0xff]  ;;  %v87_v8 = vld [vmem:[#allocation6] sm:$0xff] }
  0x1e   :  { %96 = vperm.xlu1 %211, %v47_v2   ;;  %61 = vperm.xlu0 %210, %v47_v2   ;;  %v89_v9 = vld [vmem:[#allocation6 + $0x10] sm:$0xff]  ;;  %v90_v10 = vld [vmem:[#allocation6 + $0x18] sm:$0xff]  ;;  %v88_v13 = vld [vmem:[#allocation6 + $0x8] sm:$0xff] }
  0x1f   :  { %v53_v11 = vld [vmem:[#allocation3 + $0x10] sm:$0xff]  ;;  %v54_v12 = vld [vmem:[#allocation3 + $0x18] sm:$0xff]  ;;  %v51_v14 = vld [vmem:[#allocation3] sm:$0xff] }
  0x20   :  { %v52_v15 = vld [vmem:[#allocation3 + $0x8] sm:$0xff]  ;;  %v91_v26 = vld [vmem:[#allocation6 + $0x20] sm:$0xff]  ;;  %v93_v36 = vld [vmem:[#allocation6 + $0x30] sm:$0xff] }
  0x21   :  { %v92_v27 = vld [vmem:[#allocation6 + $0x28] sm:$0xff]  ;;  %v55_v28 = vld [vmem:[#allocation3 + $0x20] sm:$0xff]  ;;  %v94_v41 = vld [vmem:[#allocation6 + $0x38] sm:$0xff] }
  0x22   :  { %100 = vperm.xlu1 %211, %v48_v3   ;;  %66 = vperm.xlu0 %210, %v48_v3   ;;  %v56_v29 = vld [vmem:[#allocation3 + $0x28] sm:$0xff]  ;;  %v57_v42 = vld [vmem:[#allocation3 + $0x30] sm:$0xff]  ;;  %v58_v43 = vld [vmem:[#allocation3 + $0x38] sm:$0xff] }
  0x26   :  { %104 = vperm.xlu1 %211, %v49_v4   ;;  %71 = vperm.xlu0 %210, %v49_v4  }
  0x2a   :  { %108 = vperm.xlu1 %211, %v50_v5   ;;  %76 = vperm.xlu0 %210, %v50_v5  }
  0x2e   :  { %212 = vset.pattern.permute.xlu0 %v291_v0 }
  0x99   :  { %v97_v6 = vpop.permute.xlu1 %96  ;;  %v62_v7 = vpop.permute.xlu0 %61 }
  0x9a   :  { %v111_v22 = vmul.f32 %v97_v6, %v87_v8  ;;  %v112_v23 = vmul.f32 %v97_v6, %v88_v13  ;;  %v79_v24 = vmul.f32 %v62_v7, %v51_v14  ;;  %v80_v25 = vmul.f32 %v62_v7, %v52_v15 }
  0x9b   :  { %v146_v6 = vstv %s347_s3  ;;  %s294_s3 = smov [#allocation8]  }
  0x9c   :  { %v119_v37 = vadd.f32 %v111_v22, %v79_v24  ;;  %v120_v38 = vadd.f32 %v112_v23, %v80_v25  ;;  %s190_s8 = sshll.u32 %s294_s3, 4  ;;  %s191_s8 = int_to_ptr.vmem [resolvable:$true] %s190_s8 }
  0x9d   :  { %v101_v16 = vpop.permute.xlu1 %100  ;;  %v67_v17 = vpop.permute.xlu0 %66  ;;  %s261_s9 = scalar_lea.vmem %s191_s8, 32  ;;  %p266_p11 = scmp.lt.s32.totalorder %s191_s8, %s191_s8 }
  0x9e   :  { %v113_v18 = vmul.f32 %v101_v16, %v89_v9  ;;  %v114_v19 = vmul.f32 %v101_v16, %v90_v10  ;;  %v81_v20 = vmul.f32 %v67_v17, %v53_v11  ;;  %v82_v21 = vmul.f32 %v67_v17, %v54_v12  ;;  %p262_p10 = scmp.ne.s32.totalorder %s191_s8, %s261_s9  ;;  %p267_p12 = scmp.lt.s32.totalorder %s261_s9, %s261_s9 }
  0x9f   :  { %v293_v17 = vmov 1966171168  }
  0xa0   :  { %v121_v30 = vadd.f32 %v113_v18, %v81_v20  ;;  %v122_v31 = vadd.f32 %v114_v19, %v82_v21  ;;  %v165_v18 = vunpack.c.l.s4 %v293_v17  ;;  %v167_v19 = vlaneseq  ;;  %p268_p13 = por %p267_p12, %p266_p11 }
  0xa1   :  { %v105_v32 = vpop.permute.xlu1 %104  ;;  %v72_v33 = vpop.permute.xlu0 %71 }
  0xa2   :  { %v115_v34 = vmul.f32 %v105_v32, %v91_v26  ;;  %v116_v35 = vmul.f32 %v105_v32, %v92_v27  ;;  %v83_v39 = vmul.f32 %v72_v33, %v55_v28  ;;  %v84_v40 = vmul.f32 %v72_v33, %v56_v29  ;;  %p269_p0 = pnand %p268_p13, %p262_p10 }
  0xa3   :  { %v127_v44 = vadd.f32 %v121_v30, %v119_v37  ;;  %v136_v45 = vadd.f32 %v122_v31, %v120_v38  ;;  %v166_v20 = vunpack.c.0.s8 %v165_v18  ;;  %v168_v21 = vshrl.u32 %v167_v19, 7 }
  0xa4   :  { %v123_v46 = vadd.f32 %v115_v34, %v83_v39  ;;  %v124_v47 = vadd.f32 %v116_v35, %v84_v40  ;;  %vm181_vm0 = vcmp.lt.s32.totalorder %v167_v19, 256 }
  0xa5   :  { %v109_v48 = vpop.permute.xlu1 %108  ;;  %v77_v49 = vpop.permute.xlu0 %76  ;;  %v169_v23 = vsub.s32 %v166_v20, %v168_v21 }
  0xa6   :  { %v117_v50 = vmul.f32 %v109_v48, %v93_v36  ;;  %v118_v51 = vmul.f32 %v109_v48, %v94_v41  ;;  %v85_v52 = vmul.f32 %v77_v49, %v57_v42  ;;  %v86_v53 = vmul.f32 %v77_v49, %v58_v43 }
  0xa7   :  { %v128_v54 = vadd.f32 %v127_v44, %v123_v46  ;;  %v137_v55 = vadd.f32 %v136_v45, %v124_v47 }
  0xa8   :  { %v125_v56 = vadd.f32 %v117_v50, %v85_v52  ;;  %v126_v57 = vadd.f32 %v118_v51, %v86_v53 }
  0xaa   :  { %v129_v58 = vadd.f32 %v128_v54, %v125_v56  ;;  %v138_v59 = vadd.f32 %v137_v55, %v126_v57 }
  0xac   :  { %v130_v60 = vrot.slane %v129_v58, 4  ;;  %v139_v61 = vrot.slane %v138_v59, 4 }
  0xae   :  { %v131_v62 = vadd.f32 %v130_v60, %v129_v58  ;;  %v140_v63 = vadd.f32 %v139_v61, %v138_v59 }
  0xb0   :  { %v132_v0 = vrot.slane %v131_v62, 2  ;;  %v141_v1 = vrot.slane %v140_v63, 2 }
  0xb2   :  { %v133_v2 = vadd.f32 %v132_v0, %v131_v62  ;;  %v142_v3 = vadd.f32 %v141_v1, %v140_v63 }
  0xb4   :  { %v134_v4 = vrot.slane %v133_v2, 1  ;;  %v143_v5 = vrot.slane %v142_v3, 1 }
  0xb6   :  { %v135_v7 = vadd.f32 %v134_v4, %v133_v2  ;;  %v144_v8 = vadd.f32 %v143_v5, %v142_v3 }
  0xb8   :  { %v147_v9 = vadd.f32 %v146_v6, %v135_v7  ;;  %v148_v10 = vadd.f32 %v146_v6, %v144_v8 }
  0xba   :  { %v200_v11 = vmul.f32 -1.442695, %v147_v9  ;;  %v201_v12 = vmul.f32 -1.442695, %v148_v10 }
  0xbc   :  { %213 = vpow2.f32 %v200_v11 }
  0xbd   :  { %215 = vpow2.f32 %v201_v12 }
  0xc9   :  { %v214_v13 = vpop.eup %213 }
  0xca   :  { %v216_v14 = vpop.eup %215  ;;  %v155_v15 = vadd.f32 1.0, %v214_v13 }
  0xcb   :  { %v156_v16 = vadd.f32 1.0, %v216_v14 }
  0xcc   :  { %217 = vrcp.f32 %v155_v15 }
  0xcd   :  { %219 = vrcp.f32 %v156_v16 }
  0xd9   :  { %v218_v22 = vpop.eup %217 }
  0xda   :  { %v220_v24 = vpop.eup %219 }
  0xdb   :  { %v163_v25 = vcombine.low %v218_v22, %v220_v24 }
  0xdd   :  { %v170_v26 = vrot.slane %v163_v25, %v169_v23 }
  0xdf   :  { %v177_v27 = vrot.slane %v170_v26, %v169_v23 }
  0xe1   :  { %183 = vst.msk [vmem:[#allocation8] sm:$0x3] %vm181_vm0, %v177_v27 }
  0xe2   :  { %272 = shalt.err (!%p269_p0)
}
  0xe3   :  { %193 = dma.vmem_to_hbm [thread:$0]  %s191_s8, 32, %s348_s4, [#allocation5]  }
  0xe4   :  { %285 = dma.done.wait [#allocation5], 32  }
  0xe5   :  { %286 = vsyncadd [#allocation5], 4294967264 }
  0xe6   :  { %197 = vsyncpa [#allocation4], 1 }
  0xe7   :  { %198 = vsyncpa [#allocation7], 1 }
  0xe8   :  { %199 = vsyncpa [#allocation5], 1 }

</bundles_post_ra>
